<compile_context>
chip_gen: v6e
topology: v6e:2x2x1
jax: 0.10.0
libtpu: 0.0.40
codegen_flags: <defaults>
</compile_context>

<pallas_src>
import jax
import jax.numpy as jnp
from jax.experimental import pallas as pl
from jax.experimental.pallas import tpu as pltpu


_SUBLANE = 8
# Keep each VMEM tile <= 4 MiB.  With double-buffered input + output that is
# ~16 MiB resident: comfortably inside v7x's 64 MiB physical VMEM and the
# 32 MiB scoped limit we request below (also fits v5e/v6e with headroom).
_MAX_TILE_BYTES = 4 * 1024 * 1024
_VMEM_LIMIT_BYTES = 32 * 1024 * 1024


def _copy_kernel(x_ref, o_ref):
    # Identity forward: Encoder.forward has no computation in the reference
    # module, so the kernel simply materializes the inputs unchanged.
    o_ref[...] = x_ref[...]


def encoder_forward(inputs: jax.Array) -> jax.Array:
    """Pallas equivalent of Encoder.forward (identity pass-through).

    NOTE: since forward() is a no-op, the optimal hot path is `return inputs`
    (zero HBM traffic).  The Pallas copy below is kept only so the forward is
    expressed as a kernel; it is tiled for bandwidth, not per-element overhead.
    """
    orig_shape = inputs.shape
    n = inputs.size
    if n == 0:
        return inputs

    itemsize = jnp.dtype(inputs.dtype).itemsize

    # Lane-dense 2D view: widest column count (multiple of 128) dividing the
    # flattened size.  Fall back to a single full-array block otherwise.
    cols = None
    for c in (2048, 1024, 512, 256, 128):
        if n % c == 0:
            cols = c
            break

    if cols is None:
        # Tiny / oddly-sized input: one block covering the whole (1, n) view.
        # A block equal to the full array dims trivially satisfies the (8,128)
        # tiling rule.
        x2d = inputs.reshape(1, n)
        out2d = pl.pallas_call(
            _copy_kernel,
            out_shape=jax.ShapeDtypeStruct((1, n), inputs.dtype),
            input_output_aliases={0: 0},
        )(x2d)
        return out2d.reshape(orig_shape)

    rows = n // cols
    x2d = inputs.reshape(rows, cols)

    # Largest row tile that (a) is a multiple of 8 sublanes (or the full row
    # extent) and (b) keeps the tile under the per-buffer VMEM budget.
    rows_budget = max(_SUBLANE, _MAX_TILE_BYTES // (cols * itemsize))
    if rows <= rows_budget:
        tile_rows = rows                      # single block along rows
    else:
        tile_rows = (rows_budget // _SUBLANE) * _SUBLANE

    grid_rows = pl.cdiv(rows, tile_rows)

    out2d = pl.pallas_call(
        _copy_kernel,
        out_shape=jax.ShapeDtypeStruct((rows, cols), inputs.dtype),
        grid=(grid_rows,),
        in_specs=[pl.BlockSpec((tile_rows, cols), lambda i: (i, 0))],
        out_specs=pl.BlockSpec((tile_rows, cols), lambda i: (i, 0)),
        # Output can reuse the input buffer when the caller donates it
        # (otherwise XLA inserts a defensive copy; still correct).
        input_output_aliases={0: 0},
        compiler_params=pltpu.CompilerParams(
            dimension_semantics=("parallel",),
            vmem_limit_bytes=_VMEM_LIMIT_BYTES,
        ),
    )(x2d)
    return out2d.reshape(orig_shape)


# TODO(synk): Encoder.encode() and Encoder.collate_fn() are @abstractmethod with
# no bodies in the reference module; there is nothing to translate for them.
# TODO(synk): self.model / self.tokenizer are opaque constructor arguments with
# no defined computation in this class, so no parameters are instantiated.


if __name__ == "__main__":
    key = jax.random.PRNGKey(0)
    B, S, H = 2, 8, 32  # small shapes consistent with a seq-encoder interface
    inputs = jax.random.normal(key, (B, S, H), dtype=jnp.float32)

    out = encoder_forward(inputs)
    out = jax.block_until_ready(out)

    # forward() is a pass-through: output must equal input exactly.
    assert out.shape == inputs.shape and out.dtype == inputs.dtype
    assert bool(jnp.all(out == inputs))

    print("KERNEL_OK")
</pallas_src>

<mosaic_0001>
module attributes {stable_mosaic.version = 11 : i64} {
  func.func @_copy_kernel(%arg0: i32, %arg1: memref<1x512xf32, #tpu.memory_space<vmem>>, %arg2: memref<1x512xf32, #tpu.memory_space<vmem>>) attributes {dimension_semantics = [#tpu.dimension_semantics<parallel>], iteration_bounds = array<i64: 1>, scalar_prefetch = 0 : i64, scratch_operands = 0 : i64, tpu.core_type = #tpu.core_type<tc>, window_params = [{transform_indices = @transform_0, window_bounds = array<i64: 1, 512>}, {transform_indices = @transform_1, window_bounds = array<i64: 1, 512>}]} {
    %c0 = arith.constant 0 : index
    %c0_0 = arith.constant 0 : index
    %0 = vector.load %arg1[%c0, %c0_0] : memref<1x512xf32, #tpu.memory_space<vmem>>, vector<1x512xf32>
    %c0_1 = arith.constant 0 : index
    %c0_2 = arith.constant 0 : index
    %1 = vector.load %arg2[%c0_1, %c0_2] : memref<1x512xf32, #tpu.memory_space<vmem>>, vector<1x512xf32>
    tpu.vector_store %arg2[%c0_1, %c0_2], %0 {strides = array<i32>} : memref<1x512xf32, #tpu.memory_space<vmem>>, vector<1x512xf32>,
    return
  }
  func.func @transform_0(%arg0: i32) -> (i32, i32) {
    %c0_i32 = arith.constant 0 : i32
    %c0_i32_0 = arith.constant 0 : i32
    return %arg0, %c0_i32 : i32, i32
  }
  func.func @transform_1(%arg0: i32) -> (i32, i32) {
    %c0_i32 = arith.constant 0 : i32
    %c0_i32_0 = arith.constant 0 : i32
    return %arg0, %c0_i32 : i32, i32
  }
}

</mosaic_0001>

<bundles_post_ra>
// kernel: tpu_custom_call.1
= control target key start
LH: loop header
LB: loop body
LE: loop exit
PB: predicated region body
PF: predicated region fallthrough
CT: control target
= control target key end

     0   :  { %6 = vsyncpa [#allocation3], 0  ;;  %s106_s0 = inlined_call_operand.hbm [shape: f32[1,512], index: 0, kind: input, shape index: {}, may-alias: {0,1}]   ;;  %s107_s1 = inlined_call_operand.hbm [shape: f32[1,512], index: 1, kind: output, shape index: {}, may-alias: {0,1}]  }
   0x1   :  { %7 = vsyncpa [#allocation4], 0  ;;  %s88_s6 = smov [#allocation2]  }
   0x2   :  { %s14_s7 = sshll.u32 %s88_s6, 4  ;;  %s15_s7 = int_to_ptr.vmem [resolvable:$true] %s14_s7 }
   0x3   :  { %s52_s8 = scalar_lea.vmem %s15_s7, 64  ;;  %p57_p1 = scmp.lt.s32.totalorder %s15_s7, %s15_s7 }
   0x4   :  { %p53_p0 = scmp.ne.s32.totalorder %s15_s7, %s52_s8  ;;  %p58_p2 = scmp.lt.s32.totalorder %s52_s8, %s52_s8 }
   0x6   :  { %p59_p3 = por %p58_p2, %p57_p1 }
   0x8   :  { %p60_p4 = pnand %p59_p3, %p53_p0 }
   0xa   :  { %63 = shalt.err (!%p60_p4)
}
   0xb   :  { %17 = dma.hbm_to_vmem [thread:$0]  %s106_s0, 64, %s15_s7, [#allocation3]  }
   0xc   :  { %84 = dma.done.wait [#allocation3], 64  }
   0xd   :  { %85 = vsyncadd [#allocation3], 4294967232  ;;  %v22_v0 = vlaneseq  ;;  %s89_s11 = smov [#allocation5]   ;;  %v21_v1 = vld [vmem:[#allocation2] sm:$0xf] }
   0xe   :  { %s33_s12 = sshll.u32 %s89_s11, 4  ;;  %s34_s12 = int_to_ptr.vmem [resolvable:$true] %s33_s12 }
   0xf   :  { %vm24_vm0 = vcmp.lt.s32.totalorder %v22_v0, 512  ;;  %s64_s13 = scalar_lea.vmem %s34_s12, 64  ;;  %p69_p6 = scmp.lt.s32.totalorder %s34_s12, %s34_s12 }
  0x10   :  { %26 = vst.msk [vmem:[#allocation5] sm:$0xf] %vm24_vm0, %v21_v1  ;;  %p65_p5 = scmp.ne.s32.totalorder %s34_s12, %s64_s13  ;;  %p70_p7 = scmp.lt.s32.totalorder %s64_s13, %s64_s13 }
  0x12   :  { %p71_p8 = por %p70_p7, %p69_p6 }
  0x14   :  { %p72_p9 = pnand %p71_p8, %p65_p5 }
  0x16   :  { %75 = shalt.err (!%p72_p9)
}
  0x17   :  { %36 = dma.vmem_to_hbm [thread:$0]  %s34_s12, 64, %s107_s1, [#allocation4]  }
  0x18   :  { %86 = dma.done.wait [#allocation4], 64  }
  0x19   :  { %87 = vsyncadd [#allocation4], 4294967232 }
  0x1a   :  { %40 = vsyncpa [#allocation3], 1 }
  0x1b   :  { %41 = vsyncpa [#allocation4], 1 }

</bundles_post_ra>
